<compile_context>
chip_gen: v5e
topology: v5e:2x2
jax: 0.10.0
libtpu: 0.0.40
codegen_flags: <defaults>
</compile_context>

<pallas_src>
import functools

import jax
import jax.numpy as jnp
from jax.experimental import pallas as pl
from jax.experimental.pallas import tpu as pltpu


def _round_up(n, m):
    return (n + m - 1) // m * m


def _vmem_capacity_bytes():
    """Physical VMEM per TensorCore; conservative (v7x-safe) fallback."""
    try:
        return int(pltpu.get_tpu_info().vmem_capacity_bytes)
    except Exception:
        return 64 << 20


# ---------------------------------------------------------------------------
# Kernel
# ---------------------------------------------------------------------------
def llama_mlp_kernel(x_ref, wgu_ref, wd_ref, o_ref, acc_ref, *, ti):
    # x_ref:   (tm, H)     token tile (compute dtype)
    # wgu_ref: (H, 2*ti)   merged [gate_k | up_k] weight slice (pre-transposed)
    # wd_ref:  (ti, H)     down-projection slice (pre-transposed)
    # o_ref:   (tm, H)     output tile
    # acc_ref: (tm, H)     f32 accumulator, resident across the reduction axis
    k = pl.program_id(1)

    @pl.when(k == 0)
    def _init():
        acc_ref[...] = jnp.zeros_like(acc_ref)

    x = x_ref[...]
    # Single MXU dot for the merged gate/up slice (one DMA + one RHS push per
    # step); the split is a static lane slice (ti is 128-aligned at real sizes).
    gu = jnp.dot(x, wgu_ref[...], preferred_element_type=jnp.float32)
    gate = gu[:, :ti]
    up = gu[:, ti:]
    h = gate * jax.nn.sigmoid(gate) * up          # SiLU(gate) * up  (VPU/EUP)
    acc_ref[...] += jnp.dot(h.astype(wd_ref.dtype), wd_ref[...],
                            preferred_element_type=jnp.float32)

    @pl.when(k == pl.num_programs(1) - 1)
    def _finalize():
        o_ref[...] = acc_ref[...].astype(o_ref.dtype)


# ---------------------------------------------------------------------------
# One-time weight preparation (hoisted out of the per-call path)
# ---------------------------------------------------------------------------
def prepare_llama_mlp_weights(w_gate_up, w_down, *, compute_dtype=jnp.bfloat16,
                              ti_target=None):
    """Split / transpose / cast / pad the torch-layout weights once.

    w_gate_up: [2*I, H]  (nn.Linear weight layout, merged gate/up)
    w_down:    [H, I]    (nn.Linear weight layout)

    Returns (w_gu_t, w_down_t, ti):
      w_gu_t:   [H, (Ip//ti)*2*ti]  per-k block k holds [gate_k | up_k]
      w_down_t: [Ip, H]
      ti:       reduction tile over the intermediate dim (static int)
    """
    two_i, H = w_gate_up.shape
    inter = two_i // 2

    if ti_target is None:
        # 64 MiB VMEM parts (v7x): small reduction tile; 128 MiB (v5e/v6e): 1024.
        ti_target = 256 if _vmem_capacity_bytes() <= (64 << 20) else 1024

    if inter <= ti_target:
        ti, i_pad = inter, inter                      # full-dim escape hatch
    else:
        ti = _round_up(min(ti_target, inter), 128)    # lane-aligned tile
        i_pad = _round_up(inter, ti)

    w_gate_t = w_gate_up[:inter, :].T.astype(compute_dtype)   # [H, I]
    w_up_t = w_gate_up[inter:, :].T.astype(compute_dtype)     # [H, I]
    w_down_t = w_down.T.astype(compute_dtype)                 # [I, H]
    if i_pad != inter:
        # Zero padding is exact: silu(0)*0 == 0 and padded W_down rows are 0.
        pad = i_pad - inter
        w_gate_t = jnp.pad(w_gate_t, ((0, 0), (0, pad)))
        w_up_t = jnp.pad(w_up_t, ((0, 0), (0, pad)))
        w_down_t = jnp.pad(w_down_t, ((0, pad), (0, 0)))

    kt = i_pad // ti
    w_gu_t = jnp.concatenate(
        [w_gate_t.reshape(H, kt, ti), w_up_t.reshape(H, kt, ti)], axis=2
    ).reshape(H, kt * 2 * ti)
    return w_gu_t, w_down_t, ti


# ---------------------------------------------------------------------------
# Tile / VMEM selection (Python-level on static shapes)
# ---------------------------------------------------------------------------
def _choose_tm_and_vmem(M, H, ti, in_bytes, out_bytes, vmem_cap):
    def footprint(tm):
        acc = tm * H * 4                          # f32 accumulator
        x_t = 2 * tm * H * in_bytes               # budget 2 bufs (actual: 1)
        o_t = 2 * tm * H * out_bytes              # double-buffered output
        w_t = 2 * (3 * ti * H) * in_bytes         # double-buffered weight slices
        return acc + x_t + o_t + w_t

    # Generation-aware budget: leave headroom for compiler-internal scratch.
    if vmem_cap <= (64 << 20):                    # v7x
        budget = 52 << 20
    else:                                         # v5e / v6e (128 MiB)
        budget = min(100 << 20, vmem_cap - (28 << 20))

    tm_pref = 1024 if M >= 1024 else 512
    tm = min(tm_pref, _round_up(M, 8))
    while tm > 128 and footprint(tm) + (4 << 20) > budget:
        tm = max(128, _round_up(tm // 2, 8))
    # Megacore (v7x has 2 TCs sharding the "parallel" axis): keep >=2 token
    # blocks for prefill-sized M instead of idling a core.
    if M >= 1024 and _round_up(M, tm) // tm < 2:
        tm = max(256, _round_up(tm // 2, 8))

    vmem_limit = int(min(max(footprint(tm) + (4 << 20), 32 << 20), budget))
    return tm, vmem_limit


# ---------------------------------------------------------------------------
# Forward (jitted; weights are pre-prepared and reused across calls)
# ---------------------------------------------------------------------------
@functools.partial(jax.jit, static_argnames=("ti",))
def llama_mlp_forward(x, w_gu_t, w_down_t, *, ti):
    """x: [B, S, H].  Weights from prepare_llama_mlp_weights.  Returns [B, S, H]."""
    B, S, H = x.shape
    M = B * S
    cdtype = w_gu_t.dtype
    out_dtype = x.dtype
    in_bytes = jnp.dtype(cdtype).itemsize
    out_bytes = jnp.dtype(out_dtype).itemsize
    i_pad = w_down_t.shape[0]
    kt = i_pad // ti

    tm, vmem_limit = _choose_tm_and_vmem(M, H, ti, in_bytes, out_bytes,
                                         _vmem_capacity_bytes())
    m_pad = _round_up(M, tm)

    x2d = x.reshape(M, H).astype(cdtype)
    if m_pad != M:
        x2d = jnp.pad(x2d, ((0, m_pad - M), (0, 0)))

    grid = (m_pad // tm, kt)

    cost = pl.CostEstimate(
        flops=int(6 * m_pad * H * i_pad),                 # 4*M*H*I + 2*M*I*H
        transcendentals=int(m_pad * i_pad),               # sigmoid
        bytes_accessed=int(m_pad * H * in_bytes           # x read once
                           + grid[0] * 3 * H * i_pad * in_bytes  # weights per i
                           + m_pad * H * out_bytes),      # output write
    )

    out2d = pl.pallas_call(
        functools.partial(llama_mlp_kernel, ti=ti),
        out_shape=jax.ShapeDtypeStruct((m_pad, H), out_dtype),
        grid_spec=pltpu.PrefetchScalarGridSpec(
            num_scalar_prefetch=0,
            grid=grid,
            in_specs=[
                # Token tile: index constant over k -> single-buffered.
                pl.BlockSpec((tm, H), lambda i, k: (i, 0),
                             pipeline_mode=pl.Buffered(1)),
                pl.BlockSpec((H, 2 * ti), lambda i, k: (0, k)),   # gate|up slice
                pl.BlockSpec((ti, H), lambda i, k: (k, 0)),       # down slice
            ],
            out_specs=pl.BlockSpec((tm, H), lambda i, k: (i, 0)),
            scratch_shapes=[pltpu.VMEM((tm, H), jnp.float32)],
        ),
        compiler_params=pltpu.CompilerParams(
            dimension_semantics=("parallel", "arbitrary"),
            vmem_limit_bytes=vmem_limit,
        ),
        cost_estimate=cost,
    )(x2d, w_gu_t, w_down_t)

    if m_pad != M:
        out2d = out2d[:M]
    return out2d.reshape(B, S, H)


def llama_mlp(x, w_gate_up, w_down, *, compute_dtype=jnp.bfloat16):
    """Convenience one-shot wrapper (prepares weights per call; prefer
    prepare_llama_mlp_weights + llama_mlp_forward in production)."""
    w_gu_t, w_down_t, ti = prepare_llama_mlp_weights(
        w_gate_up, w_down, compute_dtype=compute_dtype)
    return llama_mlp_forward(x, w_gu_t, w_down_t, ti=ti)


def _xavier_normal(key, shape):
    # shape = (out_features, in_features), matching torch nn.Linear weights.
    fan_out, fan_in = shape
    std = (2.0 / (fan_in + fan_out)) ** 0.5
    return std * jax.random.normal(key, shape, dtype=jnp.float32)


# TODO(synk): tensor-parallel Column/RowParallelLinear sharding + all-reduce of
# the non-merged path is not implemented; this kernel covers the single-device
# math (identical for merged and non-merged weights).

if __name__ == "__main__":
    # Small config consistent with the module: hidden_dim=32, intermediate_dim=64.
    B, S, H, I = 2, 8, 32, 64

    key = jax.random.PRNGKey(0)
    kx, kgu, kd = jax.random.split(key, 3)

    x = jax.random.normal(kx, (B, S, H), dtype=jnp.float32)
    # torch layout: gate_up_proj.weight [2*I, H], down_proj.weight [H, I]
    w_gate_up = _xavier_normal(kgu, (2 * I, H))
    w_down = _xavier_normal(kd, (H, I))

    # Pure-JAX reference of the PyTorch forward (f32).
    gu_ref = x @ w_gate_up.T
    gate_ref, up_ref = gu_ref[..., :I], gu_ref[..., I:]
    ref = (jax.nn.silu(gate_ref) * up_ref) @ w_down.T

    # f32 validation path (module semantics; MXU f32 multi-pass).
    wgu_f32, wd_f32, ti_f32 = prepare_llama_mlp_weights(
        w_gate_up, w_down, compute_dtype=jnp.float32)
    out = jax.block_until_ready(llama_mlp_forward(x, wgu_f32, wd_f32, ti=ti_f32))
    assert out.shape == (B, S, H)
    assert jnp.allclose(out, ref, atol=1e-4, rtol=1e-4), "f32 mismatch vs reference"

    # bf16 production path: weights prepared once, reused across calls.
    wgu_bf, wd_bf, ti_bf = prepare_llama_mlp_weights(
        w_gate_up, w_down, compute_dtype=jnp.bfloat16)
    out_bf = jax.block_until_ready(
        llama_mlp_forward(x.astype(jnp.bfloat16), wgu_bf, wd_bf, ti=ti_bf))
    assert out_bf.dtype == jnp.bfloat16
    assert jnp.allclose(out_bf.astype(jnp.float32), ref, atol=1e-1, rtol=5e-2), \
        "bf16 mismatch vs reference"

    print("KERNEL_OK")
</pallas_src>

<mosaic_0001>
module attributes {stable_mosaic.version = 11 : i64} {
  func.func @llama_mlp_kernel(%arg0: i32, %arg1: i32, %arg2: memref<16x32xf32, #tpu.memory_space<vmem>>, %arg3: memref<32x128xf32, #tpu.memory_space<vmem>>, %arg4: memref<64x32xf32, #tpu.memory_space<vmem>>, %arg5: memref<16x32xf32, #tpu.memory_space<vmem>>, %arg6: memref<16x32xf32, #tpu.memory_space<vmem>>) attributes {dimension_semantics = [#tpu.dimension_semantics<parallel>, #tpu.dimension_semantics<arbitrary>], iteration_bounds = array<i64: 1, 1>, scalar_prefetch = 0 : i64, scratch_operands = 1 : i64, tpu.core_type = #tpu.core_type<tc>, window_params = [{pipeline_mode = #tpu.pipeline_mode<synchronous>, transform_indices = @transform_0, window_bounds = array<i64: 16, 32>}, {transform_indices = @transform_1, window_bounds = array<i64: 32, 128>}, {transform_indices = @transform_2, window_bounds = array<i64: 64, 32>}, {transform_indices = @transform_3, window_bounds = array<i64: 16, 32>}]} {
    %c0_i32 = arith.constant 0 : i32
    %0 = arith.cmpi eq, %arg1, %c0_i32 : i32
    %1 = arith.extui %0 : i1 to i32
    %c0_i32_0 = arith.constant 0 : i32
    %2 = arith.cmpi ne, %1, %c0_i32_0 : i32
    scf.if %2 {
      %cst_14 = arith.constant 0.000000e+00 : f32
      %23 = vector.broadcast %cst_14 : f32 to vector<16x32xf32>
      %c0_15 = arith.constant 0 : index
      %c0_16 = arith.constant 0 : index
      %24 = vector.load %arg6[%c0_15, %c0_16] : memref<16x32xf32, #tpu.memory_space<vmem>>, vector<16x32xf32>
      tpu.vector_store %arg6[%c0_15, %c0_16], %23 {strides = array<i32>} : memref<16x32xf32, #tpu.memory_space<vmem>>, vector<16x32xf32>,
    } else {
    }
    %c0 = arith.constant 0 : index
    %c0_1 = arith.constant 0 : index
    %3 = vector.load %arg2[%c0, %c0_1] : memref<16x32xf32, #tpu.memory_space<vmem>>, vector<16x32xf32>
    %c0_2 = arith.constant 0 : index
    %c0_3 = arith.constant 0 : index
    %4 = vector.load %arg3[%c0_2, %c0_3] : memref<32x128xf32, #tpu.memory_space<vmem>>, vector<32x128xf32>
    %cst = arith.constant dense<0.000000e+00> : vector<16x128xf32>
    %5 = tpu.matmul %3, %4, %cst {dimension_numbers = #tpu.dot_dimension_numbers<[1], [0], [0], [1], [0, 0, 1, 1], [], []>} : vector<16x32xf32>, vector<32x128xf32>, vector<16x128xf32> -> vector<16x128xf32>
    %6 = vector.extract_strided_slice %5 {offsets = [0, 0], sizes = [16, 64], strides = [1, 1]} : vector<16x128xf32> to vector<16x64xf32>
    %7 = vector.extract_strided_slice %5 {offsets = [0, 64], sizes = [16, 64], strides = [1, 1]} : vector<16x128xf32> to vector<16x64xf32>
    %8 = arith.negf %6 : vector<16x64xf32>
    %9 = math.exp %8 : vector<16x64xf32>
    %cst_4 = arith.constant 1.000000e+00 : f32
    %10 = vector.broadcast %cst_4 : f32 to vector<16x64xf32>
    %11 = arith.addf %10, %9 : vector<16x64xf32>
    %12 = arith.divf %10, %11 : vector<16x64xf32>
    %13 = arith.mulf %6, %12 : vector<16x64xf32>
    %14 = arith.mulf %13, %7 : vector<16x64xf32>
    %c0_5 = arith.constant 0 : index
    %c0_6 = arith.constant 0 : index
    %15 = vector.load %arg6[%c0_5, %c0_6] : memref<16x32xf32, #tpu.memory_space<vmem>>, vector<16x32xf32>
    %c0_7 = arith.constant 0 : index
    %c0_8 = arith.constant 0 : index
    %16 = vector.load %arg4[%c0_7, %c0_8] : memref<64x32xf32, #tpu.memory_space<vmem>>, vector<64x32xf32>
    %cst_9 = arith.constant dense<0.000000e+00> : vector<16x32xf32>
    %17 = tpu.matmul %14, %16, %cst_9 {dimension_numbers = #tpu.dot_dimension_numbers<[1], [0], [0], [1], [0, 0, 1, 1], [], []>} : vector<16x64xf32>, vector<64x32xf32>, vector<16x32xf32> -> vector<16x32xf32>
    %18 = arith.addf %15, %17 : vector<16x32xf32>
    %c0_10 = arith.constant 0 : index
    %c0_11 = arith.constant 0 : index
    %19 = vector.load %arg6[%c0_10, %c0_11] : memref<16x32xf32, #tpu.memory_space<vmem>>, vector<16x32xf32>
    tpu.vector_store %arg6[%c0_10, %c0_11], %18 {strides = array<i32>} : memref<16x32xf32, #tpu.memory_space<vmem>>, vector<16x32xf32>,
    %c0_i32_12 = arith.constant 0 : i32
    %20 = arith.cmpi eq, %arg1, %c0_i32_12 : i32
    %21 = arith.extui %20 : i1 to i32
    %c0_i32_13 = arith.constant 0 : i32
    %22 = arith.cmpi ne, %21, %c0_i32_13 : i32
    scf.if %22 {
      %c0_14 = arith.constant 0 : index
      %c0_15 = arith.constant 0 : index
      %23 = vector.load %arg6[%c0_14, %c0_15] : memref<16x32xf32, #tpu.memory_space<vmem>>, vector<16x32xf32>
      %c0_16 = arith.constant 0 : index
      %c0_17 = arith.constant 0 : index
      %24 = vector.load %arg5[%c0_16, %c0_17] : memref<16x32xf32, #tpu.memory_space<vmem>>, vector<16x32xf32>
      tpu.vector_store %arg5[%c0_16, %c0_17], %23 {strides = array<i32>} : memref<16x32xf32, #tpu.memory_space<vmem>>, vector<16x32xf32>,
    } else {
    }
    return
  }
  func.func @transform_0(%arg0: i32, %arg1: i32) -> (i32, i32) {
    %c0_i32 = arith.constant 0 : i32
    %c0_i32_0 = arith.constant 0 : i32
    return %arg0, %c0_i32 : i32, i32
  }
  func.func @transform_1(%arg0: i32, %arg1: i32) -> (i32, i32) {
    %c0_i32 = arith.constant 0 : i32
    %c0_i32_0 = arith.constant 0 : i32
    return %c0_i32, %arg1 : i32, i32
  }
  func.func @transform_2(%arg0: i32, %arg1: i32) -> (i32, i32) {
    %c0_i32 = arith.constant 0 : i32
    %c0_i32_0 = arith.constant 0 : i32
    return %arg1, %c0_i32 : i32, i32
  }
  func.func @transform_3(%arg0: i32, %arg1: i32) -> (i32, i32) {
    %c0_i32 = arith.constant 0 : i32
    %c0_i32_0 = arith.constant 0 : i32
    return %arg0, %c0_i32 : i32, i32
  }
}

</mosaic_0001>

<bundles_post_ra>
// kernel: llama_mlp_forward.1
= control target key start
LH: loop header
LB: loop body
LE: loop exit
PB: predicated region body
PF: predicated region fallthrough
CT: control target
= control target key end

     0   :  { %s312_s0 = inlined_call_operand.vmem [shape: f32[16,32], index: 0, kind: input, shape index: {}]   ;;  %s313_s1 = inlined_call_operand.vmem [shape: f32[32,128], index: 1, kind: input, shape index: {}]   ;;  %s314_s2 = inlined_call_operand.vmem [shape: f32[64,32], index: 2, kind: input, shape index: {}]   ;;  %s315_s3 = inlined_call_operand.hbm [shape: f32[16,32], index: 3, kind: output, shape index: {}]  }
   0x1   :  { %v27_v0 = vld [vmem:[%s313_s1 + $0x18] sm:$0xff]  ;;  %v26_v1 = vld [vmem:[%s313_s1 + $0x10] sm:$0xff]  ;;  %v25_v2 = vld [vmem:[%s313_s1 + $0x8] sm:$0xff] }
   0x2   :  { %47 = vmatpush.msra.mxu0 %v27_v0  ;;  %183 = vmatpush.msra.mxu3 %v27_v0 }
   0x3   :  { %8 = vsyncpa [#allocation4], 0  ;;  %v24_v3 = vld [vmem:[%s313_s1] sm:$0xff]  ;;  %vm19_vm0 = vcmask 261120   ;;  %v23_v5 = vld [vmem:[%s312_s0 + $0x8] sm:$0xff]  ;;  %v235_v24 = vmov 0.0  }
   0x4   :  { %48 = vmatpush.msra.mxu0 %v26_v1  ;;  %184 = vmatpush.msra.mxu3 %v26_v1  ;;  %v22_v4 = vld [vmem:[%s312_s0] sm:$0xff]  ;;  %v117_v6 = vld [vmem:[%s314_s2 + $0x38] sm:$0xff]  ;;  %v116_v7 = vld [vmem:[%s314_s2 + $0x30] sm:$0xff]  ;;  %s234_s0 = smov 64   ;;  %21 = vst.msk [vmem:[#allocation2 + $0x8] sm:$0xff] %vm19_vm0, %v235_v24  ;;  %vm118_vm8 = vcmask 523264  }
   0x5   :  { %187 = vmatpush.msra.mxu2 %v117_v6  ;;  %133 = vmatpush.msra.mxu1 %v117_v6  ;;  %v115_v8 = vld [vmem:[%s314_s2 + $0x28] sm:$0xff]  ;;  %v114_v10 = vld [vmem:[%s314_s2 + $0x20] sm:$0xff]  ;;  %v113_v11 = vld [vmem:[%s314_s2 + $0x18] sm:$0xff]  ;;  %20 = vst.msk [vmem:[#allocation2] sm:$0xff] %vm19_vm0, %v235_v24  ;;  %s165_s15 = sshll.u32 %s315_s3, 4  ;;  %s237_s16 = smov 128   ;;  %s166_s15 = int_to_ptr.hbm [resolvable:$true] %s165_s15 }
   0x6   :  { %49 = vmatpush.msra.mxu0 %v25_v2  ;;  %185 = vmatpush.msra.mxu3 %v25_v2  ;;  %v112_v12 = vld [vmem:[%s314_s2 + $0x10] sm:$0xff]  ;;  %v111_v13 = vld [vmem:[%s314_s2 + $0x8] sm:$0xff]  ;;  %v110_v20 = vld [vmem:[%s314_s2] sm:$0xff]  ;;  %s236_s2 = smov [#allocation3]   ;;  %s238_s17 = smov 8  }
   0x7   :  { %188 = vmatpush.msra.mxu2 %v116_v7  ;;  %134 = vmatpush.msra.mxu1 %v116_v7  ;;  %s163_s12 = sshll.u32 %s236_s2, 4  ;;  %s164_s12 = int_to_ptr.vmem [resolvable:$true] %s163_s12 }
   0x8   :  { %50 = vmatpush.msra.mxu0 %v24_v3  ;;  %186 = vmatpush.msra.mxu3 %v24_v3 }
   0x9   :  { %177 = vmatmul.msk.f32.vlgmr.msra.gmra.mxu0 %vm19_vm0, %v22_v4  ;;  %178 = vmatmul.msk.f32.vlgmr.msra.gmra.mxu3 %vm19_vm0, %v23_v5 }
   0xa   :  { %189 = vmatpush.msra.mxu2 %v115_v8  ;;  %135 = vmatpush.msra.mxu1 %v115_v8 }
   0xb   :  { %v109_v49 = vld [vmem:[#allocation2 + $0x8] sm:$0xff] }
   0xc   :  { %190 = vmatpush.msra.mxu2 %v114_v10  ;;  %136 = vmatpush.msra.mxu1 %v114_v10  ;;  %v108_v51 = vld [vmem:[#allocation2] sm:$0xff] }
   0xe   :  { %191 = vmatpush.msra.mxu2 %v113_v11  ;;  %137 = vmatpush.msra.mxu1 %v113_v11 }
  0x10   :  { %192 = vmatpush.msra.mxu2 %v112_v12  ;;  %138 = vmatpush.msra.mxu1 %v112_v12 }
  0x12   :  { %193 = vmatpush.msra.mxu2 %v111_v13  ;;  %139 = vmatpush.msra.mxu1 %v111_v13 }
  0x14   :  { %194 = vmatpush.msra.mxu2 %v110_v20  ;;  %140 = vmatpush.msra.mxu1 %v110_v20 }
  0x86   :  { %v52_v14 = vpop.f32.mrf.mxu0 }
  0x87   :  { %v179_v16 = vmul.f32 -1.442695, %v52_v14 }
  0x8c   :  { %v55_v9 = vpop.f32.mrf.mxu3 }
  0x8d   :  { %102 = vrot.lane.b32.xlu0 %v55_v9, %s234_s0  ;;  %v180_v15 = vmul.f32 -1.442695, %v55_v9 }
  0x8f   :  { %200 = vpow2.f32 %v180_v15 }
  0x90   :  { %202 = vpow2.f32 %v179_v16 }
  0x95   :  { %100 = vrot.lane.b32.xlu0 %v52_v14, %s234_s0  ;;  %v201_v17 = vpop.eup %200 }
  0x96   :  { %v65_v18 = vadd.f32 1.0, %v201_v17  ;;  %v203_v19 = vpop.eup %202 }
  0x97   :  { %v64_v21 = vadd.f32 1.0, %v203_v19 }
  0x98   :  { %204 = vrcp.f32 %v65_v18  ;;  %v92_v31 = vand.u32 2147483648, %v65_v18  ;;  %vm86_vm2 = vweird.f32 %v65_v18  ;;  %v90_v32 = vand.u32 2147483647, %v65_v18 }
  0x99   :  { %206 = vrcp.f32 %v64_v21  ;;  %vm71_vm4 = vweird.f32 %v64_v21  ;;  %v77_v36 = vand.u32 2147483648, %v64_v21  ;;  %v75_v39 = vand.u32 2147483647, %v64_v21 }
  0x9a   :  { %v93_v35 = vor.u32 1.1754944e-38, %v92_v31  ;;  %vm91_vm6 = vcmp.eq.f32.partialorder %v90_v32, 8.507059e+37 }
  0x9b   :  { %v78_v41 = vor.u32 1.1754944e-38, %v77_v36  ;;  %vm76_vm9 = vcmp.eq.f32.partialorder %v75_v39, 8.507059e+37 }
  0x9e   :  { %v205_v22 = vpop.eup %204 }
  0x9f   :  { %v82_v23 = vmul.f32 %v205_v22, %v65_v18  ;;  %v207_v26 = vpop.eup %206  ;;  %vm87_vm1 = vweird.f32 %v205_v22 }
  0xa0   :  { %v67_v27 = vmul.f32 %v207_v26, %v64_v21  ;;  %vm88_vm3 = vmor %vm86_vm2, %vm87_vm1  ;;  %vm72_vm5 = vweird.f32 %v207_v26 }
  0xa1   :  { %v83_v25 = vsub.f32 1.0, %v82_v23  ;;  %vm73_vm7 = vmor %vm71_vm4, %vm72_vm5 }
  0xa2   :  { %v68_v29 = vsub.f32 1.0, %v67_v27 }
  0xa3   :  { %v84_v28 = vmul.f32 %v205_v22, %v83_v25 }
  0xa4   :  { %v69_v33 = vmul.f32 %v207_v26, %v68_v29 }
  0xa5   :  { %v85_v30 = vadd.f32 %v205_v22, %v84_v28 }
  0xa6   :  { %v70_v38 = vadd.f32 %v207_v26, %v69_v33 }
  0xa7   :  { %v89_v34 = vsel %vm88_vm3, %v205_v22, %v85_v30 }
  0xa8   :  { %v94_v37 = vsel %vm91_vm6, %v93_v35, %v89_v34  ;;  %v74_v43 = vsel %vm73_vm7, %v207_v26, %v70_v38 }
  0xa9   :  { %v97_v40 = vmul.f32 %v94_v37, %v55_v9  ;;  %v79_v45 = vsel %vm76_vm9, %v78_v41, %v74_v43 }
  0xaa   :  { %v96_v46 = vmul.f32 %v79_v45, %v52_v14 }
  0xff   :  { %v103_v42 = vpop.permute.xlu0 %102 }
 0x100   :  { %v107_v44 = vmul.f32 %v103_v42, %v97_v40 }
 0x102   :  { %182 = vmatmul.msk.f32.vlgmr.msra.gmra.mxu2 %vm118_vm8, %v107_v44 }
 0x107   :  { %v101_v47 = vpop.permute.xlu0 %100 }
 0x108   :  { %v106_v48 = vmul.f32 %v101_v47, %v96_v46 }
 0x10a   :  { %181 = vmatmul.msk.f32.vlgmr.msra.gmra.mxu1 %vm118_vm8, %v106_v48 }
 0x185   :  { %v145_v50 = vpop.f32.mrf.mxu2 }
 0x186   :  { %v149_v52 = vadd.f32 %v145_v50, %v109_v49 }
 0x187   :  { %v142_v53 = vpop.f32.mrf.mxu1 }
 0x188   :  { %151 = vst.msk [vmem:[#allocation2 + $0x8] sm:$0xff] %vm19_vm0, %v149_v52  ;;  %v148_v54 = vadd.f32 %v142_v53, %v108_v51 }
 0x18a   :  { %150 = vst.msk [vmem:[#allocation2] sm:$0xff] %vm19_vm0, %v148_v54 }
 0x18f   :  { %v156_v55 = vld [vmem:[#allocation2 + $0x8] sm:$0xff] }
 0x190   :  { %158 = vst.msk [vmem:[#allocation3 + $0x8] sm:$0xff] %vm19_vm0, %v156_v55 }
 0x191   :  { %v155_v56 = vld [vmem:[#allocation2] sm:$0xff] }
 0x192   :  { %157 = vst.msk [vmem:[#allocation3] sm:$0xff] %vm19_vm0, %v155_v56 }
 0x193   :  { %171 = dma.vmem_to_hbm [thread:$0]  %s164_s12, 256, %s166_s15, [#allocation4], %s237_s16, %s237_s16, %s238_s17  }
 0x194   :  { %232 = dma.done.wait [#allocation4], 256  }
 0x195   :  { %233 = vsyncadd [#allocation4], 4294967040 }
 0x196   :  { %176 = vsyncpa [#allocation4], 1 }

</bundles_post_ra>
